<compile_context>
chip_gen: v6e
topology: v6e:2x2x1
jax: 0.10.0
libtpu: 0.0.40
codegen_flags: <defaults>
</compile_context>

<pallas_src>
import functools

import jax
import jax.numpy as jnp
from jax.experimental import pallas as pl
from jax.experimental.pallas import tpu as pltpu


# ---------------------------------------------------------------------------
# Kernel
# ---------------------------------------------------------------------------
def _to_tensor_kernel(nb_ref, tok_ref, len_ref, out_ref, *, padding_value, tl):
    """out[b, j] = tokens[b, j] if j < lengths[b] else padding_value (cast)."""
    del nb_ref  # only consumed by the tokens index_map (column-block clamp)
    j = pl.program_id(1)
    # Global column index of every lane in this block.
    col = j * tl + jax.lax.broadcasted_iota(jnp.int32, out_ref.shape, dimension=1)
    mask = col < len_ref[...]                     # (tb, 1) broadcasts over lanes
    pad = jnp.asarray(padding_value, out_ref.dtype)
    # For column blocks past this row-tile's last valid block, tok_ref holds a
    # stale (deduped) tile, but mask is all-False there, so we emit pure pad.
    out_ref[...] = jnp.where(mask, tok_ref[...].astype(out_ref.dtype), pad)


# ---------------------------------------------------------------------------
# Tile selection helpers
# ---------------------------------------------------------------------------
def _round_down(x, m):
    return (x // m) * m


def _tpu_vmem_capacity_bytes():
    try:
        cap = getattr(pltpu.get_tpu_info(), "vmem_capacity_bytes", None)
        if cap:
            return int(cap)
    except Exception:
        pass
    return 128 << 20


def _pick_tiles(B, L, itemsize, sub, budget_bytes):
    """Byte-budget tile picker: tokens/out tile ~= budget_bytes.

    Grows tl (lanes, multiple of 128) when B is small and tb (rows, multiple
    of `sub`) when L is small; full-extent blocks when a dim is tiny.
    """
    budget_elems = max(budget_bytes // itemsize, sub * 128)
    # Lane (last) dim: moderate start, multiple of 128 (or full extent).
    if L <= 128:
        tl = L
    else:
        tl = min(_round_down(L, 128), 2048)
    # Row dim from remaining budget.
    if B <= sub:
        tb = B
    else:
        tb = min(_round_down(B, sub),
                 max(sub, _round_down(budget_elems // tl, sub)))
    # Rows exhausted but budget left (small B, huge L) -> grow lanes.
    if L > 128:
        tl = min(_round_down(L, 128),
                 max(tl, _round_down(budget_elems // max(tb, 1), 128)))
    return tb, tl


def _ensure_multistep(B, L, tb, tl, sub):
    """A (1,1) grid leaves one v7x TensorCore idle; split one parallel axis.

    Extra grid steps cost ~0.35us on single-TC chips (negligible)."""
    if pl.cdiv(B, tb) * pl.cdiv(L, tl) > 1:
        return tb, tl
    can_rows = B >= 2 * sub
    can_lanes = L >= 2 * 128
    if can_rows and (not can_lanes or B // sub >= L // 128):
        tb = max(sub, _round_down(tb // 2, sub))
    elif can_lanes:
        tl = max(128, _round_down(tl // 2, 128))
    return tb, tl


# ---------------------------------------------------------------------------
# Wrapper
# ---------------------------------------------------------------------------
def to_tensor(tokens, lengths, padding_value=None, dtype=jnp.int32,
              *, tb=None, tl=None, donate_tokens=False):
    """Pallas equivalent of F.to_tensor(batch_of_lists, padding_value, dtype).

    tokens : [B, L_max] integer ragged buffer (junk past each row's length)
    lengths: [B] or [B, 1] int32 per-sequence lengths (clamped to [0, L_max])
    """
    B, L = tokens.shape
    lengths = jnp.clip(lengths.reshape(B, 1).astype(jnp.int32), 0, L)

    if padding_value is None:
        # torchtext: with no padding_value all sequences must share a length,
        # so pad slots are never selected; 0 is a harmless filler.
        padding_value = 0

    out_dtype = jnp.dtype(dtype)
    # TODO(synk): int64 (torch.long default) emulated with int32 (see header).
    if out_dtype == jnp.dtype(jnp.int64):
        out_dtype = jnp.dtype(jnp.int32)
    elif out_dtype == jnp.dtype(jnp.float64):
        out_dtype = jnp.dtype(jnp.float32)

    in_item = jnp.dtype(tokens.dtype).itemsize
    out_item = out_dtype.itemsize
    # Sublane granularity grows for packed (sub-32-bit) dtypes on either side.
    sub = 8 * max(1, 4 // min(in_item, out_item, 4))

    # Generation-aware byte budget: v7x (64 MiB VMEM/TC, ~3.2 TB/s HBM) wants
    # bigger tiles to amortize the fixed grid-step cost; v5e/v6e use ~4 MiB.
    phys_vmem = _tpu_vmem_capacity_bytes()
    tile_budget = (8 << 20) if phys_vmem <= (64 << 20) else (4 << 20)

    if tb is None or tl is None:
        auto_tb, auto_tl = _pick_tiles(B, L, max(in_item, out_item), sub,
                                       tile_budget)
        auto_tb, auto_tl = _ensure_multistep(B, L, auto_tb, auto_tl, sub)
        tb = auto_tb if tb is None else tb
        tl = auto_tl if tl is None else tl

    n_row = pl.cdiv(B, tb)
    n_col = pl.cdiv(L, tl)
    grid = (n_row, n_col)              # column axis innermost (lengths DMA dedup)

    # Per-row-tile count of column blocks that contain any valid token.  The
    # tokens index_map clamps its column block to this, so fully-padded tail
    # tiles repeat the previous block index and their input DMA is skipped.
    lp = jnp.pad(lengths.reshape(B), (0, n_row * tb - B))
    row_max = lp.reshape(n_row, tb).max(axis=1)
    needed_blocks = jnp.maximum((row_max + tl - 1) // tl, 1).astype(jnp.int32)

    kernel = functools.partial(_to_tensor_kernel,
                               padding_value=padding_value, tl=tl)

    def tok_map(i, j, nb):
        return (i, jnp.minimum(j, jnp.maximum(nb[i] - 1, 0)))

    # Double-buffered tokens/out tiles + lane-padded lengths tiles + headroom.
    # Raises v5e's 16 MiB default scoped-VMEM limit; stays under v7x's 64 MiB.
    live = 2 * tb * tl * (in_item + out_item) + 2 * tb * 128 * 4
    vmem_limit = int(min(max(32 << 20, live + (8 << 20)),
                         phys_vmem - (8 << 20)))
    vmem_limit = int(max(vmem_limit, live + (2 << 20)))

    # Optional donation of the tokens buffer (off by default: torch returns a
    # fresh tensor).  Call-arg index 1 = tokens, since the scalar-prefetch
    # operand `needed_blocks` is call-arg 0.
    aliases = {1: 0} if (donate_tokens and out_dtype == tokens.dtype) else {}

    out = pl.pallas_call(
        kernel,
        out_shape=jax.ShapeDtypeStruct((B, L), out_dtype),
        grid_spec=pltpu.PrefetchScalarGridSpec(
            num_scalar_prefetch=1,
            grid=grid,
            in_specs=[
                pl.BlockSpec((tb, tl), tok_map),
                pl.BlockSpec((tb, 1), lambda i, j, nb: (i, 0)),
            ],
            out_specs=pl.BlockSpec((tb, tl), lambda i, j, nb: (i, j)),
        ),
        compiler_params=pltpu.CompilerParams(
            dimension_semantics=("parallel", "parallel"),
            vmem_limit_bytes=vmem_limit),
        input_output_aliases=aliases,
    )(needed_blocks, tokens, lengths)

    return out


# ---------------------------------------------------------------------------
# Reference + tests
# ---------------------------------------------------------------------------
def _reference(tokens, lengths, padding_value):
    B, L = tokens.shape
    col = jnp.arange(L)[None, :]
    return jnp.where(col < lengths.reshape(B, 1), tokens, padding_value)


def _make_case(key, B, L_max):
    k_tok, k_len = jax.random.split(key)
    lengths = jax.random.randint(k_len, (B,), minval=1, maxval=L_max + 1,
                                 dtype=jnp.int32)
    raw = jax.random.randint(k_tok, (B, L_max), minval=1, maxval=1000,
                             dtype=jnp.int32)
    col = jnp.arange(L_max)[None, :]
    # Positions past each length hold garbage (-1) the kernel must overwrite.
    tokens = jnp.where(col < lengths[:, None], raw, -1)
    return tokens, raw, lengths


if __name__ == "__main__":
    key = jax.random.PRNGKey(0)
    k1, k2, k3 = jax.random.split(key, 3)

    # Case 1: tiny, single-block (B=8, L=16) — matches the module's demo scale.
    tokens1, raw1, lengths1 = _make_case(k1, B=8, L_max=16)
    out1 = jax.block_until_ready(to_tensor(tokens1, lengths1, padding_value=7,
                                           dtype=jnp.int32))
    ref1 = _reference(raw1, lengths1, 7)
    assert out1.shape == (8, 16) and out1.dtype == jnp.int32
    assert jnp.array_equal(out1, ref1)

    # Case 2: non-divisible shapes (B=12, L=160) -> 2x2 grid with partial
    # trailing blocks on both axes (exercises remainder handling).
    tokens2, raw2, lengths2 = _make_case(k2, B=12, L_max=160)
    out2 = jax.block_until_ready(to_tensor(tokens2, lengths2, padding_value=0,
                                           dtype=jnp.int32))
    ref2 = _reference(raw2, lengths2, 0)
    assert out2.shape == (12, 160) and out2.dtype == jnp.int32
    assert jnp.array_equal(out2, ref2)

    # Case 3: explicit small tiles + short lengths so trailing column blocks
    # are pure padding -> exercises the scalar-prefetch index-map clamp that
    # skips the tokens DMA over the padded tail.
    B3, L3 = 16, 512
    kl, kt = jax.random.split(k3)
    lengths3 = jax.random.randint(kl, (B3,), minval=1, maxval=100,
                                  dtype=jnp.int32)
    raw3 = jax.random.randint(kt, (B3, L3), minval=1, maxval=1000,
                              dtype=jnp.int32)
    tokens3 = jnp.where(jnp.arange(L3)[None, :] < lengths3[:, None], raw3, -1)
    out3 = jax.block_until_ready(
        to_tensor(tokens3, lengths3, padding_value=-5, dtype=jnp.int32,
                  tb=8, tl=128))
    ref3 = _reference(raw3, lengths3, -5)
    assert jnp.array_equal(out3, ref3)

    # Case 4: dtype cast folded into the kernel (float32 output).
    out4 = jax.block_until_ready(
        to_tensor(tokens2, lengths2, padding_value=3, dtype=jnp.float32))
    ref4 = _reference(raw2, lengths2, 3).astype(jnp.float32)
    assert out4.dtype == jnp.float32 and jnp.array_equal(out4, ref4)

    print("KERNEL_OK")
</pallas_src>

<mosaic_0001>
module attributes {stable_mosaic.version = 11 : i64} {
  func.func @_to_tensor_kernel(%arg0: i32, %arg1: i32, %arg2: memref<1xi32, #tpu.memory_space<smem>>, %arg3: memref<8x16xi32, #tpu.memory_space<vmem>>, %arg4: memref<8x1xi32, #tpu.memory_space<vmem>>, %arg5: memref<8x16xi32, #tpu.memory_space<vmem>>) attributes {dimension_semantics = [#tpu.dimension_semantics<parallel>, #tpu.dimension_semantics<parallel>], iteration_bounds = array<i64: 1, 1>, scalar_prefetch = 1 : i64, scratch_operands = 0 : i64, tpu.core_type = #tpu.core_type<tc>, window_params = [{transform_indices = @transform_0, window_bounds = array<i64: 8, 16>}, {transform_indices = @transform_1, window_bounds = array<i64: 8, 1>}, {transform_indices = @transform_2, window_bounds = array<i64: 8, 16>}]} {
    %c16_i32 = arith.constant 16 : i32
    %0 = arith.muli %arg1, %c16_i32 : i32
    %1 = tpu.iota {dimensions = array<i32: 1>} : vector<8x16xi32>
    %2 = vector.broadcast %0 : i32 to vector<8x16xi32>
    %3 = arith.addi %2, %1 : vector<8x16xi32>
    %c0 = arith.constant 0 : index
    %c0_0 = arith.constant 0 : index
    %4 = vector.load %arg4[%c0, %c0_0] : memref<8x1xi32, #tpu.memory_space<vmem>>, vector<8x1xi32>
    %5 = vector.broadcast %4 : vector<8x1xi32> to vector<8x16xi32>
    %6 = arith.cmpi slt, %3, %5 : vector<8x16xi32>
    %c0_1 = arith.constant 0 : index
    %c0_2 = arith.constant 0 : index
    %7 = vector.load %arg3[%c0_1, %c0_2] : memref<8x16xi32, #tpu.memory_space<vmem>>, vector<8x16xi32>
    %c7_i32 = arith.constant 7 : i32
    %8 = vector.broadcast %c7_i32 : i32 to vector<8x16xi32>
    %9 = arith.select %6, %7, %8 : vector<8x16xi1>, vector<8x16xi32>
    %c0_3 = arith.constant 0 : index
    %c0_4 = arith.constant 0 : index
    %10 = vector.load %arg5[%c0_3, %c0_4] : memref<8x16xi32, #tpu.memory_space<vmem>>, vector<8x16xi32>
    tpu.vector_store %arg5[%c0_3, %c0_4], %9 {strides = array<i32>} : memref<8x16xi32, #tpu.memory_space<vmem>>, vector<8x16xi32>,
    return
  }
  func.func @transform_0(%arg0: i32, %arg1: i32, %arg2: memref<1xi32, #tpu.memory_space<smem>>) -> (i32, i32) {
    %0 = arith.index_cast %arg0 : i32 to index
    %1 = memref.load %arg2[%0] : memref<1xi32, #tpu.memory_space<smem>>
    %c1_i32 = arith.constant 1 : i32
    %2 = arith.subi %1, %c1_i32 : i32
    %c0_i32 = arith.constant 0 : i32
    %3 = arith.maxsi %2, %c0_i32 : i32
    %4 = arith.minsi %arg1, %3 : i32
    %c0_i32_0 = arith.constant 0 : i32
    return %arg0, %4 : i32, i32
  }
  func.func @transform_1(%arg0: i32, %arg1: i32, %arg2: memref<1xi32, #tpu.memory_space<smem>>) -> (i32, i32) {
    %c0_i32 = arith.constant 0 : i32
    %c0_i32_0 = arith.constant 0 : i32
    return %arg0, %c0_i32 : i32, i32
  }
  func.func @transform_2(%arg0: i32, %arg1: i32, %arg2: memref<1xi32, #tpu.memory_space<smem>>) -> (i32, i32) {
    %c0_i32 = arith.constant 0 : i32
    return %arg0, %arg1 : i32, i32
  }
}

</mosaic_0001>

<bundles_post_ra>
// kernel: tpu_custom_call.1
= control target key start
LH: loop header
LB: loop body
LE: loop exit
PB: predicated region body
PF: predicated region fallthrough
CT: control target
= control target key end

     0   :  { %s160_s0 = inlined_call_operand.<no memory space> [shape: s32[1], index: 0, kind: input, shape index: {}]   ;;  %s161_s1 = inlined_call_operand.vmem [shape: s32[8,16], index: 1, kind: input, shape index: {}]   ;;  %s162_s2 = inlined_call_operand.vmem [shape: s32[8,1], index: 2, kind: input, shape index: {}]   ;;  %s163_s3 = inlined_call_operand.hbm [shape: s32[8,16], index: 3, kind: output, shape index: {}]  }
   0x1   :  { %v61_v0 = vld [vmem:[%s162_s2] sm:$0xff] }
   0x2   :  { %9 = vsyncpa [#allocation5], 0  ;;  %v129_v1 = vmov 0   ;;  %v57_v2 = vlaneseq  ;;  %s130_s0 = smov [#allocation4]   ;;  %v66_v4 = vld [vmem:[%s161_s1] sm:$0xff]  ;;  %vm68_vm0 = vcmask 130048  }
   0x3   :  { %106 = vset.pattern.permute.xlu0 %v129_v1  ;;  %s76_s14 = sshll.u32 %s130_s0, 4  ;;  %s77_s14 = int_to_ptr.vmem [resolvable:$true] %s76_s14 }
   0x4   :  { %63 = vperm.xlu0 %106, %v61_v0   ;;  %v58_v3 = vand.u32 127, %v57_v2  ;;  %s107_s17 = scalar_lea.vmem %s77_s14, 128  ;;  %p112_p1 = scmp.lt.s32.totalorder %s77_s14, %s77_s14 }
   0x5   :  { %p108_p0 = scmp.ne.s32.totalorder %s77_s14, %s107_s17  ;;  %p113_p2 = scmp.lt.s32.totalorder %s107_s17, %s107_s17 }
   0x7   :  { %p114_p3 = por %p113_p2, %p112_p1 }
   0x9   :  { %p115_p4 = pnand %p114_p3, %p108_p0 }
  0x7f   :  { %v64_v5 = vpop.permute.xlu0 %63 }
  0x80   :  { %vm65_vm1 = vcmp.lt.s32.totalorder %v58_v3, %v64_v5 }
  0x81   :  { %v67_v6 = vsel %vm65_vm1, %v66_v4, 7 }
  0x82   :  { %69 = vst.msk [vmem:[#allocation4] sm:$0xff] %vm68_vm0, %v67_v6 }
  0x83   :  { %118 = shalt.err (!%p115_p4)
}
  0x84   :  { %79 = dma.vmem_to_hbm [thread:$0]  %s77_s14, 128, %s163_s3, [#allocation5]  }
  0x85   :  { %127 = dma.done.wait [#allocation5], 128  }
  0x86   :  { %128 = vsyncadd [#allocation5], 4294967168 }
  0x87   :  { %83 = vsyncpa [#allocation5], 1 }

</bundles_post_ra>
